<compile_context>
chip_gen: v5e
topology: v5e:2x2
jax: 0.10.0
libtpu: 0.0.40
codegen_flags: <defaults>
</compile_context>

<pallas_src>
import numpy as np
import jax
import jax.numpy as jnp
from jax import lax
from jax.experimental import pallas as pl
from jax.experimental.pallas import tpu as pltpu

B = 8          # batch
H = W = 7      # minigrid-style observation
CIN = 3
A = 7          # action_space.n


# ----------------------------- Pallas kernel --------------------------------
def lwac_kernel(x_ref, w1_ref, rest_ref, out_ref):
    # x_ref   : (B, 147)      obs flattened row-major over (y, x, c)
    # w1_ref  : (4, 147, 144) conv1-as-matmul operator, one slab per pool corner
    # rest_ref: (160, 512)    conv2 / conv3 / fused head weights + all biases
    # out_ref : (B, 128)      cols [0,A): log-probs, col A: value, rest: 0
    x = x_ref[...]                                                  # (B, 147)

    # ---- conv1 + 2x2 maxpool: 4 corner matmuls + 3 full-slab maxes ----------
    z = jnp.maximum(
        jnp.maximum(jnp.dot(x, w1_ref[0], preferred_element_type=jnp.float32),
                    jnp.dot(x, w1_ref[1], preferred_element_type=jnp.float32)),
        jnp.maximum(jnp.dot(x, w1_ref[2], preferred_element_type=jnp.float32),
                    jnp.dot(x, w1_ref[3], preferred_element_type=jnp.float32)))
    b1 = rest_ref[144:145, 0:144]                                   # (1, 144)
    pooled = jnp.maximum(z + b1, 0.0)                               # (B, 144) = 3x3 grid x 16ch

    # ---- conv2 (16->32) on the 3x3 grid -> 2x2 grid, one matmul -------------
    w2 = rest_ref[0:144, 0:128]
    b2 = rest_ref[152:153, 0:128]
    h2 = jnp.maximum(
        jnp.dot(pooled, w2, preferred_element_type=jnp.float32) + b2, 0.0)   # (B, 128)

    # ---- conv3 (32->64) on the 2x2 grid -> flattened embedding --------------
    w3 = rest_ref[0:128, 128:192]
    b3 = rest_ref[152:153, 128:192]
    emb = jnp.maximum(
        jnp.dot(h2, w3, preferred_element_type=jnp.float32) + b3, 0.0)       # (B, 64)

    # ---- fused actor|critic hidden layer ------------------------------------
    wh1 = rest_ref[0:64, 256:384]                                   # [wa1 | wc1]
    bh1 = rest_ref[144:145, 256:384]
    hh = jnp.tanh(jnp.dot(emb, wh1, preferred_element_type=jnp.float32) + bh1)  # (B, 128)

    # ---- fused block-diagonal output layer -----------------------------------
    wh2 = rest_ref[0:128, 384:512]                                  # logits cols [0,A), value col A
    bh2 = rest_ref[144:145, 384:512]
    out = jnp.dot(hh, wh2, preferred_element_type=jnp.float32) + bh2          # (B, 128)

    # ---- masked log_softmax over the first A lanes (value lane untouched) ----
    lane = lax.broadcasted_iota(jnp.int32, (B, 128), 1)
    is_logit = lane < A
    m = jnp.max(jnp.where(is_logit, out, -1e30), axis=-1, keepdims=True)
    e = jnp.where(is_logit, jnp.exp(out - m), 0.0)
    lse = m + jnp.log(jnp.sum(e, axis=-1, keepdims=True))
    out_ref[...] = jnp.where(is_logit, out - lse, out)


# ------------------------------ wrapper --------------------------------------
def lwac_forward(obs, packed):
    w1p, rest = packed
    x2d = obs.reshape(obs.shape[0], -1)        # (B, 147) contiguous reshape (bitcast)
    vmem = lambda: pl.BlockSpec(memory_space=pltpu.MemorySpace.VMEM)
    # No grid: at B=8 a (2,)-grid over batch halves (for v7x's second TensorCore)
    # would cost more in per-step overhead + sublane padding than it gains; add a
    # parallel grid axis only if batch grows to >=16.
    out = pl.pallas_call(
        lwac_kernel,
        out_shape=jax.ShapeDtypeStruct((B, 128), jnp.float32),
        in_specs=[vmem(), vmem(), vmem()],
        out_specs=vmem(),
        compiler_params=pltpu.CompilerParams(vmem_limit_bytes=8 * 1024 * 1024),
        cost_estimate=pl.CostEstimate(flops=2_173_952,
                                      transcendentals=2056,
                                      bytes_accessed=675_168),
    )(x2d, w1p, rest)
    return out[:, :A], out[:, A]


# --------------------------- deterministic params ----------------------------
def make_params(key):
    ks = jax.random.split(key, 14)

    def wmat(k, shape, gain):
        fan_in = 1
        for d in shape[:-1]:
            fan_in *= d
        return (gain / jnp.sqrt(jnp.float32(fan_in))) * jax.random.normal(k, shape, jnp.float32)

    def bias(k, n):
        return 0.1 * jax.random.normal(k, (n,), jnp.float32)   # nonzero to exercise bias paths

    relu_g, tanh_g = 2.0 ** 0.5, 5.0 / 3.0
    w1 = wmat(ks[0], (2, 2, CIN, 16), relu_g); b1 = bias(ks[1], 16)
    w2 = wmat(ks[2], (2, 2, 16, 32), relu_g);  b2 = bias(ks[3], 32)
    w3 = wmat(ks[4], (2, 2, 32, 64), relu_g);  b3 = bias(ks[5], 64)
    wa1 = wmat(ks[6], (64, 64), tanh_g);  ba1 = bias(ks[7], 64)
    wa2 = wmat(ks[8], (64, A), 1.0);      ba2 = bias(ks[9], A)
    wc1 = wmat(ks[10], (64, 64), tanh_g); bc1 = bias(ks[11], 64)
    wc2 = wmat(ks[12], (64, 1), 1.0);     bc2 = bias(ks[13], 1)
    return (w1, b1, w2, b2, w3, b3, wa1, ba1, wa2, ba2, wc1, bc1, wc2, bc2)


# ------------------ one-time host-side parameter packing ---------------------
def pack_params(params):
    (w1, b1, w2, b2, w3, b3, wa1, ba1, wa2, ba2, wc1, bc1, wc2, bc2) = \
        [np.asarray(p, np.float32) for p in params]

    # conv1 as 4 dense (147 -> 144) operators, one per 2x2 maxpool corner.
    # Input lane q = y*21 + x*3 + c ; output lane = (i*3+j)*16 + co  (pool cell i,j).
    w1p = np.zeros((4, H * W * CIN, 9 * 16), np.float32)
    for di in range(2):
        for dj in range(2):
            corner = di * 2 + dj
            for i in range(3):
                for j in range(3):
                    Y, X = 2 * i + di, 2 * j + dj           # conv1 output position
                    cell = i * 3 + j
                    for dy in range(2):
                        for dx in range(2):
                            r0 = ((Y + dy) * W + (X + dx)) * CIN
                            w1p[corner, r0:r0 + CIN, cell * 16:(cell + 1) * 16] = w1[dy, dx]

    rest = np.zeros((160, 512), np.float32)
    # conv2 as (144 -> 128): rows cell*16+ci, cols (u*2+v)*32+co
    for u in range(2):
        for v in range(2):
            for di in range(2):
                for dj in range(2):
                    cell = (u + di) * 3 + (v + dj)
                    rest[cell * 16:(cell + 1) * 16,
                         (u * 2 + v) * 32:(u * 2 + v) * 32 + 32] = w2[di, dj]
    # conv3 as (128 -> 64): rows (u*2+v)*32+ci, stored at cols [128,192)
    for u in range(2):
        for v in range(2):
            rest[(u * 2 + v) * 32:(u * 2 + v) * 32 + 32, 128:192] = w3[u, v]
    # fused head layer 1: [wa1 | wc1] at cols [256,384)
    rest[0:64, 256:320] = wa1
    rest[0:64, 320:384] = wc1
    # fused block-diagonal head layer 2 at cols [384,512)
    rest[0:64, 384:384 + A] = wa2
    rest[64:128, 384 + A] = wc2[:, 0]
    # biases (row 144 and row 152 are sublane-aligned)
    rest[144, 0:144] = np.tile(b1, 9)
    rest[144, 256:320] = ba1
    rest[144, 320:384] = bc1
    rest[144, 384:384 + A] = ba2
    rest[144, 384 + A] = bc2[0]
    rest[152, 0:128] = np.tile(b2, 4)
    rest[152, 128:192] = b3
    return jnp.asarray(w1p), jnp.asarray(rest)


# ------------------------------ pure-JAX reference ---------------------------
def reference(obs, params):
    (w1, b1, w2, b2, w3, b3, wa1, ba1, wa2, ba2, wc1, bc1, wc2, bc2) = params
    dn = ('NHWC', 'HWIO', 'NHWC')
    h = lax.conv_general_dilated(obs, w1, (1, 1), 'VALID', dimension_numbers=dn) + b1
    h = jnp.maximum(h, 0.0)
    h = h.reshape(B, 3, 2, 3, 2, 16).max(axis=(2, 4))          # 2x2 maxpool
    h = jnp.maximum(lax.conv_general_dilated(h, w2, (1, 1), 'VALID',
                                             dimension_numbers=dn) + b2, 0.0)
    h = jnp.maximum(lax.conv_general_dilated(h, w3, (1, 1), 'VALID',
                                             dimension_numbers=dn) + b3, 0.0)
    emb = h.reshape(B, -1)
    ha = jnp.tanh(emb @ wa1 + ba1)
    logp = jax.nn.log_softmax(ha @ wa2 + ba2, axis=-1)
    hc = jnp.tanh(emb @ wc1 + bc1)
    value = (hc @ wc2 + bc2)[:, 0]
    return logp, value


if __name__ == "__main__":
    key = jax.random.PRNGKey(0)
    kobs, kparam = jax.random.split(key)
    obs = jax.random.uniform(kobs, (B, H, W, CIN), jnp.float32)
    params = make_params(kparam)
    packed = pack_params(params)          # one-time host-side packing (2 slabs)

    logp, value = jax.jit(lwac_forward)(obs, packed)
    jax.block_until_ready((logp, value))

    ref_logp, ref_value = reference(obs, params)
    assert logp.shape == (B, A) and value.shape == (B,)
    assert bool(jnp.all(jnp.isfinite(logp))) and bool(jnp.all(jnp.isfinite(value)))
    assert jnp.allclose(logp, ref_logp, atol=5e-2, rtol=5e-2), "actor head mismatch"
    assert jnp.allclose(value, ref_value, atol=5e-2, rtol=5e-2), "critic head mismatch"
    print("KERNEL_OK")
</pallas_src>

<mosaic_0001>
module attributes {stable_mosaic.version = 11 : i64} {
  func.func @lwac_kernel(%arg0: memref<8x147xf32, #tpu.memory_space<vmem>>, %arg1: memref<4x147x144xf32, #tpu.memory_space<vmem>>, %arg2: memref<160x512xf32, #tpu.memory_space<vmem>>, %arg3: memref<8x128xf32, #tpu.memory_space<vmem>>) attributes {dimension_semantics = [], scalar_prefetch = 0 : i64, scratch_operands = 0 : i64, tpu.core_type = #tpu.core_type<tc>} {
    %c0 = arith.constant 0 : index
    %c0_0 = arith.constant 0 : index
    %0 = vector.load %arg0[%c0, %c0_0] : memref<8x147xf32, #tpu.memory_space<vmem>>, vector<8x147xf32>
    %c0_1 = arith.constant 0 : index
    %c0_2 = arith.constant 0 : index
    %c0_3 = arith.constant 0 : index
    %1 = vector.load %arg1[%c0_1, %c0_2, %c0_3] : memref<4x147x144xf32, #tpu.memory_space<vmem>>, vector<1x147x144xf32>
    %2 = vector.shape_cast %1 : vector<1x147x144xf32> to vector<147x144xf32>
    %cst = arith.constant dense<0.000000e+00> : vector<8x144xf32>
    %3 = tpu.matmul %0, %2, %cst {dimension_numbers = #tpu.dot_dimension_numbers<[1], [0], [0], [1], [0, 0, 1, 1], [], []>} : vector<8x147xf32>, vector<147x144xf32>, vector<8x144xf32> -> vector<8x144xf32>
    %c1 = arith.constant 1 : index
    %c0_4 = arith.constant 0 : index
    %c0_5 = arith.constant 0 : index
    %4 = vector.load %arg1[%c1, %c0_4, %c0_5] : memref<4x147x144xf32, #tpu.memory_space<vmem>>, vector<1x147x144xf32>
    %5 = vector.shape_cast %4 : vector<1x147x144xf32> to vector<147x144xf32>
    %cst_6 = arith.constant dense<0.000000e+00> : vector<8x144xf32>
    %6 = tpu.matmul %0, %5, %cst_6 {dimension_numbers = #tpu.dot_dimension_numbers<[1], [0], [0], [1], [0, 0, 1, 1], [], []>} : vector<8x147xf32>, vector<147x144xf32>, vector<8x144xf32> -> vector<8x144xf32>
    %7 = arith.maximumf %3, %6 : vector<8x144xf32>
    %c2 = arith.constant 2 : index
    %c0_7 = arith.constant 0 : index
    %c0_8 = arith.constant 0 : index
    %8 = vector.load %arg1[%c2, %c0_7, %c0_8] : memref<4x147x144xf32, #tpu.memory_space<vmem>>, vector<1x147x144xf32>
    %9 = vector.shape_cast %8 : vector<1x147x144xf32> to vector<147x144xf32>
    %cst_9 = arith.constant dense<0.000000e+00> : vector<8x144xf32>
    %10 = tpu.matmul %0, %9, %cst_9 {dimension_numbers = #tpu.dot_dimension_numbers<[1], [0], [0], [1], [0, 0, 1, 1], [], []>} : vector<8x147xf32>, vector<147x144xf32>, vector<8x144xf32> -> vector<8x144xf32>
    %c3 = arith.constant 3 : index
    %c0_10 = arith.constant 0 : index
    %c0_11 = arith.constant 0 : index
    %11 = vector.load %arg1[%c3, %c0_10, %c0_11] : memref<4x147x144xf32, #tpu.memory_space<vmem>>, vector<1x147x144xf32>
    %12 = vector.shape_cast %11 : vector<1x147x144xf32> to vector<147x144xf32>
    %cst_12 = arith.constant dense<0.000000e+00> : vector<8x144xf32>
    %13 = tpu.matmul %0, %12, %cst_12 {dimension_numbers = #tpu.dot_dimension_numbers<[1], [0], [0], [1], [0, 0, 1, 1], [], []>} : vector<8x147xf32>, vector<147x144xf32>, vector<8x144xf32> -> vector<8x144xf32>
    %14 = arith.maximumf %10, %13 : vector<8x144xf32>
    %15 = arith.maximumf %7, %14 : vector<8x144xf32>
    %c144 = arith.constant 144 : index
    %c0_13 = arith.constant 0 : index
    %16 = vector.load %arg2[%c144, %c0_13] : memref<160x512xf32, #tpu.memory_space<vmem>>, vector<1x144xf32>
    %17 = vector.broadcast %16 : vector<1x144xf32> to vector<8x144xf32>
    %18 = arith.addf %15, %17 : vector<8x144xf32>
    %cst_14 = arith.constant 0.000000e+00 : f32
    %19 = vector.broadcast %cst_14 : f32 to vector<8x144xf32>
    %20 = arith.maximumf %18, %19 : vector<8x144xf32>
    %c0_15 = arith.constant 0 : index
    %c0_16 = arith.constant 0 : index
    %21 = vector.load %arg2[%c0_15, %c0_16] : memref<160x512xf32, #tpu.memory_space<vmem>>, vector<144x128xf32>
    %c152 = arith.constant 152 : index
    %c0_17 = arith.constant 0 : index
    %22 = vector.load %arg2[%c152, %c0_17] : memref<160x512xf32, #tpu.memory_space<vmem>>, vector<1x128xf32>
    %cst_18 = arith.constant dense<0.000000e+00> : vector<8x128xf32>
    %23 = tpu.matmul %20, %21, %cst_18 {dimension_numbers = #tpu.dot_dimension_numbers<[1], [0], [0], [1], [0, 0, 1, 1], [], []>} : vector<8x144xf32>, vector<144x128xf32>, vector<8x128xf32> -> vector<8x128xf32>
    %24 = vector.broadcast %22 : vector<1x128xf32> to vector<8x128xf32>
    %25 = arith.addf %23, %24 : vector<8x128xf32>
    %cst_19 = arith.constant 0.000000e+00 : f32
    %26 = vector.broadcast %cst_19 : f32 to vector<8x128xf32>
    %27 = arith.maximumf %25, %26 : vector<8x128xf32>
    %c0_20 = arith.constant 0 : index
    %c128 = arith.constant 128 : index
    %28 = vector.load %arg2[%c0_20, %c128] : memref<160x512xf32, #tpu.memory_space<vmem>>, vector<128x64xf32>
    %c152_21 = arith.constant 152 : index
    %c128_22 = arith.constant 128 : index
    %29 = vector.load %arg2[%c152_21, %c128_22] : memref<160x512xf32, #tpu.memory_space<vmem>>, vector<1x64xf32>
    %cst_23 = arith.constant dense<0.000000e+00> : vector<8x64xf32>
    %30 = tpu.matmul %27, %28, %cst_23 {dimension_numbers = #tpu.dot_dimension_numbers<[1], [0], [0], [1], [0, 0, 1, 1], [], []>} : vector<8x128xf32>, vector<128x64xf32>, vector<8x64xf32> -> vector<8x64xf32>
    %31 = vector.broadcast %29 : vector<1x64xf32> to vector<8x64xf32>
    %32 = arith.addf %30, %31 : vector<8x64xf32>
    %cst_24 = arith.constant 0.000000e+00 : f32
    %33 = vector.broadcast %cst_24 : f32 to vector<8x64xf32>
    %34 = arith.maximumf %32, %33 : vector<8x64xf32>
    %c0_25 = arith.constant 0 : index
    %c256 = arith.constant 256 : index
    %35 = vector.load %arg2[%c0_25, %c256] : memref<160x512xf32, #tpu.memory_space<vmem>>, vector<64x128xf32>
    %c144_26 = arith.constant 144 : index
    %c256_27 = arith.constant 256 : index
    %36 = vector.load %arg2[%c144_26, %c256_27] : memref<160x512xf32, #tpu.memory_space<vmem>>, vector<1x128xf32>
    %cst_28 = arith.constant dense<0.000000e+00> : vector<8x128xf32>
    %37 = tpu.matmul %34, %35, %cst_28 {dimension_numbers = #tpu.dot_dimension_numbers<[1], [0], [0], [1], [0, 0, 1, 1], [], []>} : vector<8x64xf32>, vector<64x128xf32>, vector<8x128xf32> -> vector<8x128xf32>
    %38 = vector.broadcast %36 : vector<1x128xf32> to vector<8x128xf32>
    %39 = arith.addf %37, %38 : vector<8x128xf32>
    %40 = math.tanh %39 : vector<8x128xf32>
    %c0_29 = arith.constant 0 : index
    %c384 = arith.constant 384 : index
    %41 = vector.load %arg2[%c0_29, %c384] : memref<160x512xf32, #tpu.memory_space<vmem>>, vector<128x128xf32>
    %c144_30 = arith.constant 144 : index
    %c384_31 = arith.constant 384 : index
    %42 = vector.load %arg2[%c144_30, %c384_31] : memref<160x512xf32, #tpu.memory_space<vmem>>, vector<1x128xf32>
    %cst_32 = arith.constant dense<0.000000e+00> : vector<8x128xf32>
    %43 = tpu.matmul %40, %41, %cst_32 {dimension_numbers = #tpu.dot_dimension_numbers<[1], [0], [0], [1], [0, 0, 1, 1], [], []>} : vector<8x128xf32>, vector<128x128xf32>, vector<8x128xf32> -> vector<8x128xf32>
    %44 = vector.broadcast %42 : vector<1x128xf32> to vector<8x128xf32>
    %45 = arith.addf %43, %44 : vector<8x128xf32>
    %46 = tpu.iota {dimensions = array<i32: 1>} : vector<8x128xi32>
    %c7_i32 = arith.constant 7 : i32
    %47 = vector.broadcast %c7_i32 : i32 to vector<8x128xi32>
    %48 = arith.cmpi slt, %46, %47 : vector<8x128xi32>
    %cst_33 = arith.constant -1.000000e+30 : f32
    %49 = vector.broadcast %cst_33 : f32 to vector<8x128xf32>
    %50 = arith.select %48, %45, %49 : vector<8x128xi1>, vector<8x128xf32>
    %cst_34 = arith.constant dense<0xFF800000> : vector<8xf32>
    %51 = vector.multi_reduction <maximumf>, %50, %cst_34 [1] : vector<8x128xf32> to vector<8xf32>
    %52 = vector.shape_cast %51 : vector<8xf32> to vector<8x1xf32>
    %53 = vector.broadcast %52 : vector<8x1xf32> to vector<8x128xf32>
    %54 = arith.subf %45, %53 : vector<8x128xf32>
    %55 = math.exp %54 : vector<8x128xf32>
    %cst_35 = arith.constant 0.000000e+00 : f32
    %56 = vector.broadcast %cst_35 : f32 to vector<8x128xf32>
    %57 = arith.select %48, %55, %56 : vector<8x128xi1>, vector<8x128xf32>
    %cst_36 = arith.constant dense<0.000000e+00> : vector<8xf32>
    %58 = vector.multi_reduction <add>, %57, %cst_36 [1] : vector<8x128xf32> to vector<8xf32>
    %59 = vector.shape_cast %58 : vector<8xf32> to vector<8x1xf32>
    %60 = math.log %59 : vector<8x1xf32>
    %61 = arith.addf %52, %60 : vector<8x1xf32>
    %62 = vector.broadcast %61 : vector<8x1xf32> to vector<8x128xf32>
    %63 = arith.subf %45, %62 : vector<8x128xf32>
    %64 = arith.select %48, %63, %45 : vector<8x128xi1>, vector<8x128xf32>
    %c0_37 = arith.constant 0 : index
    %c0_38 = arith.constant 0 : index
    %65 = vector.load %arg3[%c0_37, %c0_38] : memref<8x128xf32, #tpu.memory_space<vmem>>, vector<8x128xf32>
    tpu.vector_store %arg3[%c0_37, %c0_38], %64 {strides = array<i32>} : memref<8x128xf32, #tpu.memory_space<vmem>>, vector<8x128xf32>,
    return
  }
}

</mosaic_0001>

<bundles_post_ra>
// kernel: lwac_forward.1
= control target key start
LH: loop header
LB: loop body
LE: loop exit
PB: predicated region body
PF: predicated region fallthrough
CT: control target
= control target key end

     0   :  { %vm58_vm0 = vcmask 1042432   ;;  %vm54_vm1 = vcmask 154624   ;;  %vm556_vm2 = vcmask 130048   ;;  %vm648_vm3 = vcmask 523264   ;;  %s1584_s1 = inlined_call_operand.vmem [shape: f32[4,147,144], index: 1, kind: input, shape index: {}]   ;;  %s1585_s0 = inlined_call_operand.vmem [shape: f32[8,147], index: 0, kind: input, shape index: {}]   ;;  %s1586_s2 = inlined_call_operand.vmem [shape: f32[160,512], index: 2, kind: input, shape index: {}]   ;;  %s1587_s3 = inlined_call_operand.vmem [shape: f32[8,128], index: 3, kind: output, shape index: {}]  }
   0x1   :  { %v46_v0 = vld [vmem:[%s1584_s1 + $0xf0] sm:$0xff]  ;;  %v52_v1 = vld [vmem:[%s1584_s1 + $0x120] sm:$0x7]  ;;  %v53_v2 = vld [vmem:[%s1584_s1 + $0x128] sm:$0x7] }
   0x2   :  { %65 = vmatpush.msra.mxu0 %v46_v0  ;;  %732 = vmatpush.msk.msra.mxu2 %vm58_vm0, %v52_v1  ;;  %v44_v3 = vld [vmem:[%s1584_s1 + $0xe0] sm:$0xff]  ;;  %v50_v4 = vld [vmem:[%s1584_s1 + $0x110] sm:$0xff]  ;;  %v51_v5 = vld [vmem:[%s1584_s1 + $0x118] sm:$0xff] }
   0x3   :  { %734 = vmatpush.msk.msra.mxu3 %vm58_vm0, %v53_v2  ;;  %v42_v6 = vld [vmem:[%s1584_s1 + $0xd0] sm:$0xff]  ;;  %v48_v7 = vld [vmem:[%s1584_s1 + $0x100] sm:$0xff]  ;;  %v49_v8 = vld [vmem:[%s1584_s1 + $0x108] sm:$0xff] }
   0x4   :  { %66 = vmatpush.msra.mxu0 %v44_v3  ;;  %99 = vmatpush.msra.mxu2 %v50_v4  ;;  %v47_v9 = vld [vmem:[%s1584_s1 + $0xf8] sm:$0xff]  ;;  %v772_v10 = vld [vmem:[%s1584_s1 + $0x250] sm:$0x7]  ;;  %v40_v11 = vld [vmem:[%s1584_s1 + $0xc0] sm:$0xff] }
   0x5   :  { %139 = vmatpush.msra.mxu3 %v51_v5  ;;  %v45_v12 = vld [vmem:[%s1584_s1 + $0xe8] sm:$0xff]  ;;  %v770_v13 = vld [vmem:[%s1584_s1 + $0x240] sm:$0xff]  ;;  %v38_v14 = vld [vmem:[%s1584_s1 + $0xb0] sm:$0xff] }
   0x6   :  { %67 = vmatpush.msra.mxu0 %v42_v6  ;;  %100 = vmatpush.msra.mxu2 %v48_v7  ;;  %v941_v15 = vld [vmem:[%s1585_s0 + $0x8] sm:$0xff]  ;;  %v43_v16 = vld [vmem:[%s1584_s1 + $0xd8] sm:$0xff]  ;;  %v766_v17 = vld [vmem:[%s1584_s1 + $0x220] sm:$0xff] }
   0x7   :  { %140 = vmatpush.msra.mxu3 %v49_v8  ;;  %v768_v18 = vld [vmem:[%s1584_s1 + $0x230] sm:$0xff]  ;;  %v36_v19 = vld [vmem:[%s1584_s1 + $0xa0] sm:$0xff]  ;;  %v767_v20 = vld [vmem:[%s1584_s1 + $0x228] sm:$0xff]  ;;  %190 = vmatpush.msra.mxu1 %v766_v17 }
   0x8   :  { %105 = vmatpush.msrb.mxu2 %v47_v9  ;;  %68 = vmatpush.msra.mxu0 %v40_v11  ;;  %v41_v21 = vld [vmem:[%s1584_s1 + $0xc8] sm:$0xff]  ;;  %v34_v22 = vld [vmem:[%s1584_s1 + $0x90] sm:$0xff]  ;;  %v765_v24 = vld [vmem:[%s1584_s1 + $0x218] sm:$0xff] }
   0x9   :  { %774 = vmatpush.msk.msrb.mxu3 %vm58_vm0, %v772_v10  ;;  %v764_v23 = vld [vmem:[%s1584_s1 + $0x210] sm:$0xff]  ;;  %v39_v25 = vld [vmem:[%s1584_s1 + $0xb8] sm:$0xff]  ;;  %v32_v26 = vld [vmem:[%s1584_s1 + $0x80] sm:$0xff]  ;;  %733 = vmatmul.msk.f32.vlgmr.msra.gmra.mxu2 %vm54_vm1, %v941_v15 }
   0xa   :  { %106 = vmatpush.msrb.mxu2 %v45_v12  ;;  %735 = vmatmul.msk.f32.vlgmr.msra.gmra.mxu3 %vm54_vm1, %v941_v15  ;;  %v762_v27 = vld [vmem:[%s1584_s1 + $0x200] sm:$0xff]  ;;  %v763_v28 = vld [vmem:[%s1584_s1 + $0x208] sm:$0xff]  ;;  %v30_v30 = vld [vmem:[%s1584_s1 + $0x70] sm:$0xff] }
   0xb   :  { %224 = vmatpush.msrb.mxu3 %v770_v13  ;;  %69 = vmatpush.msra.mxu0 %v38_v14  ;;  %v37_v29 = vld [vmem:[%s1584_s1 + $0xa8] sm:$0xff]  ;;  %v760_v31 = vld [vmem:[%s1584_s1 + $0x1f0] sm:$0xff]  ;;  %v761_v32 = vld [vmem:[%s1584_s1 + $0x1f8] sm:$0xff] }
   0xc   :  { %107 = vmatpush.msrb.mxu2 %v43_v16  ;;  %191 = vmatpush.msra.mxu1 %v764_v23  ;;  %v35_v33 = vld [vmem:[%s1584_s1 + $0x98] sm:$0xff]  ;;  %v28_v34 = vld [vmem:[%s1584_s1 + $0x60] sm:$0xff]  ;;  %v759_v36 = vld [vmem:[%s1584_s1 + $0x1e8] sm:$0xff] }
   0xd   :  { %225 = vmatpush.msrb.mxu3 %v768_v18  ;;  %70 = vmatpush.msra.mxu0 %v36_v19  ;;  %v758_v35 = vld [vmem:[%s1584_s1 + $0x1e0] sm:$0xff]  ;;  %v33_v37 = vld [vmem:[%s1584_s1 + $0x88] sm:$0xff]  ;;  %v26_v38 = vld [vmem:[%s1584_s1 + $0x50] sm:$0xff] }
   0xe   :  { %108 = vmatpush.msrb.mxu2 %v41_v21  ;;  %192 = vmatpush.msra.mxu1 %v762_v27  ;;  %v756_v39 = vld [vmem:[%s1584_s1 + $0x1d0] sm:$0xff]  ;;  %v757_v40 = vld [vmem:[%s1584_s1 + $0x1d8] sm:$0xff]  ;;  %v24_v42 = vld [vmem:[%s1584_s1 + $0x40] sm:$0xff] }
   0xf   :  { %230 = vmatpush.msra.mxu3 %v767_v20  ;;  %71 = vmatpush.msra.mxu0 %v34_v22  ;;  %v31_v41 = vld [vmem:[%s1584_s1 + $0x78] sm:$0xff]  ;;  %v754_v43 = vld [vmem:[%s1584_s1 + $0x1c0] sm:$0xff]  ;;  %v755_v44 = vld [vmem:[%s1584_s1 + $0x1c8] sm:$0xff] }
  0x10   :  { %109 = vmatpush.msrb.mxu2 %v39_v25  ;;  %193 = vmatpush.msra.mxu1 %v760_v31  ;;  %v29_v45 = vld [vmem:[%s1584_s1 + $0x68] sm:$0xff]  ;;  %v22_v46 = vld [vmem:[%s1584_s1 + $0x30] sm:$0xff]  ;;  %v753_v48 = vld [vmem:[%s1584_s1 + $0x1b8] sm:$0xff] }
  0x11   :  { %231 = vmatpush.msra.mxu3 %v765_v24  ;;  %72 = vmatpush.msra.mxu0 %v32_v26  ;;  %v752_v47 = vld [vmem:[%s1584_s1 + $0x1b0] sm:$0xff]  ;;  %v27_v49 = vld [vmem:[%s1584_s1 + $0x58] sm:$0xff]  ;;  %v20_v50 = vld [vmem:[%s1584_s1 + $0x20] sm:$0xff] }
  0x12   :  { %110 = vmatpush.msrb.mxu2 %v37_v29  ;;  %194 = vmatpush.msra.mxu1 %v758_v35  ;;  %v750_v51 = vld [vmem:[%s1584_s1 + $0x1a0] sm:$0xff]  ;;  %v751_v52 = vld [vmem:[%s1584_s1 + $0x1a8] sm:$0xff]  ;;  %v18_v54 = vld [vmem:[%s1584_s1 + $0x10] sm:$0xff] }
  0x13   :  { %232 = vmatpush.msra.mxu3 %v763_v28  ;;  %73 = vmatpush.msra.mxu0 %v30_v30  ;;  %v25_v53 = vld [vmem:[%s1584_s1 + $0x48] sm:$0xff]  ;;  %v749_v55 = vld [vmem:[%s1584_s1 + $0x198] sm:$0xff]  ;;  %v748_v57 = vld [vmem:[%s1584_s1 + $0x190] sm:$0xff] }
  0x14   :  { %111 = vmatpush.msrb.mxu2 %v35_v33  ;;  %195 = vmatpush.msra.mxu1 %v756_v39  ;;  %v23_v56 = vld [vmem:[%s1584_s1 + $0x38] sm:$0xff]  ;;  %v16_v58 = vld [vmem:[%s1584_s1] sm:$0xff]  ;;  %v747_v59 = vld [vmem:[%s1584_s1 + $0x188] sm:$0xff] }
  0x15   :  { %233 = vmatpush.msra.mxu3 %v761_v32  ;;  %74 = vmatpush.msra.mxu0 %v28_v34  ;;  %v21_v60 = vld [vmem:[%s1584_s1 + $0x28] sm:$0xff]  ;;  %v746_v61 = vld [vmem:[%s1584_s1 + $0x180] sm:$0xff]  ;;  %v773_v62 = vld [vmem:[%s1584_s1 + $0x258] sm:$0x7] }
  0x16   :  { %112 = vmatpush.msrb.mxu2 %v33_v37  ;;  %196 = vmatpush.msra.mxu1 %v754_v43  ;;  %v745_v63 = vld [vmem:[%s1584_s1 + $0x178] sm:$0xff]  ;;  %v744_v1 = vld [vmem:[%s1584_s1 + $0x170] sm:$0xff]  ;;  %v771_v2 = vld [vmem:[%s1584_s1 + $0x248] sm:$0xff] }
  0x17   :  { %234 = vmatpush.msra.mxu3 %v759_v36  ;;  %75 = vmatpush.msra.mxu0 %v26_v38  ;;  %v19_v0 = vld [vmem:[%s1584_s1 + $0x18] sm:$0xff]  ;;  %v743_v3 = vld [vmem:[%s1584_s1 + $0x168] sm:$0xff]  ;;  %v742_v5 = vld [vmem:[%s1584_s1 + $0x160] sm:$0xff] }
  0x18   :  { %113 = vmatpush.msrb.mxu2 %v31_v41  ;;  %197 = vmatpush.msra.mxu1 %v752_v47  ;;  %v17_v4 = vld [vmem:[%s1584_s1 + $0x8] sm:$0xff]  ;;  %v769_v6 = vld [vmem:[%s1584_s1 + $0x238] sm:$0xff]  ;;  %v1119_v7 = vld [vmem:[%s1585_s0] sm:$0xff] }
  0x19   :  { %235 = vmatpush.msra.mxu3 %v757_v40  ;;  %76 = vmatpush.msra.mxu0 %v24_v42  ;;  %v741_v8 = vld [vmem:[%s1584_s1 + $0x158] sm:$0xff]  ;;  %v808_v9 = vld [vmem:[%s1584_s1 + $0x350] sm:$0xff]  ;;  %v739_v12 = vld [vmem:[%s1584_s1 + $0x148] sm:$0xff] }
  0x1a   :  { %114 = vmatpush.msrb.mxu2 %v29_v45  ;;  %198 = vmatpush.msra.mxu1 %v750_v51  ;;  %v809_v10 = vld [vmem:[%s1584_s1 + $0x358] sm:$0xff]  ;;  %v740_v11 = vld [vmem:[%s1584_s1 + $0x150] sm:$0xff]  ;;  %v806_v13 = vld [vmem:[%s1584_s1 + $0x340] sm:$0xff] }
  0x1b   :  { %236 = vmatpush.msra.mxu3 %v755_v44  ;;  %77 = vmatpush.msra.mxu0 %v22_v46  ;;  %v807_v14 = vld [vmem:[%s1584_s1 + $0x348] sm:$0xff]  ;;  %v738_v16 = vld [vmem:[%s1584_s1 + $0x140] sm:$0xff]  ;;  %v737_v17 = vld [vmem:[%s1584_s1 + $0x138] sm:$0xff] }
  0x1c   :  { %115 = vmatpush.msrb.mxu2 %v27_v49  ;;  %199 = vmatpush.msra.mxu1 %v748_v57  ;;  %v804_v18 = vld [vmem:[%s1584_s1 + $0x330] sm:$0xff]  ;;  %v805_v19 = vld [vmem:[%s1584_s1 + $0x338] sm:$0xff]  ;;  %v802_v21 = vld [vmem:[%s1584_s1 + $0x320] sm:$0xff] }
  0x1d   :  { %237 = vmatpush.msra.mxu3 %v753_v48  ;;  %78 = vmatpush.msra.mxu0 %v20_v50  ;;  %v736_v20 = vld [vmem:[%s1584_s1 + $0x130] sm:$0xff]  ;;  %v803_v22 = vld [vmem:[%s1584_s1 + $0x328] sm:$0xff]  ;;  %v850_v23 = vld [vmem:[%s1584_s1 + $0x480] sm:$0xff] }
  0x1e   :  { %116 = vmatpush.msrb.mxu2 %v25_v53  ;;  %200 = vmatpush.msra.mxu1 %v746_v61  ;;  %v800_v24 = vld [vmem:[%s1584_s1 + $0x310] sm:$0xff]  ;;  %v801_v25 = vld [vmem:[%s1584_s1 + $0x318] sm:$0xff]  ;;  %v798_v27 = vld [vmem:[%s1584_s1 + $0x300] sm:$0xff] }
  0x1f   :  { %238 = vmatpush.msra.mxu3 %v751_v52  ;;  %79 = vmatpush.msra.mxu0 %v18_v54  ;;  %v848_v26 = vld [vmem:[%s1584_s1 + $0x470] sm:$0xff]  ;;  %v815_v28 = vld [vmem:[%s1584_s1 + $0x388] sm:$0x7]  ;;  %v846_v30 = vld [vmem:[%s1584_s1 + $0x460] sm:$0xff] }
  0x20   :  { %117 = vmatpush.msrb.mxu2 %v23_v56  ;;  %201 = vmatpush.msra.mxu1 %v744_v1  ;;  %v799_v29 = vld [vmem:[%s1584_s1 + $0x308] sm:$0xff]  ;;  %v796_v31 = vld [vmem:[%s1584_s1 + $0x2f0] sm:$0xff]  ;;  %v813_v32 = vld [vmem:[%s1584_s1 + $0x378] sm:$0xff] }
  0x21   :  { %239 = vmatpush.msra.mxu3 %v749_v55  ;;  %80 = vmatpush.msra.mxu0 %v16_v58  ;;  %v797_v33 = vld [vmem:[%s1584_s1 + $0x2f8] sm:$0xff]  ;;  %v844_v34 = vld [vmem:[%s1584_s1 + $0x450] sm:$0xff]  ;;  %v794_v35 = vld [vmem:[%s1584_s1 + $0x2e0] sm:$0xff] }
  0x22   :  { %118 = vmatpush.msrb.mxu2 %v21_v60  ;;  %775 = vmatmul.msk.f32.vlgmr.msrb.gmra.mxu3 %vm54_vm1, %v941_v15  ;;  %v811_v36 = vld [vmem:[%s1584_s1 + $0x368] sm:$0xff]  ;;  %v842_v38 = vld [vmem:[%s1584_s1 + $0x440] sm:$0xff]  ;;  %v792_v39 = vld [vmem:[%s1584_s1 + $0x2d0] sm:$0xff] }
  0x23   :  { %240 = vmatpush.msra.mxu3 %v747_v59  ;;  %776 = vmatpush.msk.msrb.mxu0 %vm58_vm0, %v773_v62  ;;  %v795_v37 = vld [vmem:[%s1584_s1 + $0x2e8] sm:$0xff]  ;;  %v856_v40 = vld [vmem:[%s1584_s1 + $0x4b0] sm:$0x7]  ;;  %v793_v41 = vld [vmem:[%s1584_s1 + $0x2d8] sm:$0xff] }
  0x24   :  { %119 = vmatpush.msrb.mxu2 %v19_v0  ;;  %202 = vmatpush.msra.mxu1 %v742_v5  ;;  %v840_v42 = vld [vmem:[%s1584_s1 + $0x430] sm:$0xff]  ;;  %v790_v43 = vld [vmem:[%s1584_s1 + $0x2c0] sm:$0xff]  ;;  %v791_v45 = vld [vmem:[%s1584_s1 + $0x2c8] sm:$0xff] }
  0x25   :  { %241 = vmatpush.msra.mxu3 %v745_v63  ;;  %264 = vmatpush.msrb.mxu0 %v771_v2  ;;  %v854_v44 = vld [vmem:[%s1584_s1 + $0x4a0] sm:$0xff]  ;;  %v788_v47 = vld [vmem:[%s1584_s1 + $0x2b0] sm:$0xff]  ;;  %v789_v49 = vld [vmem:[%s1584_s1 + $0x2b8] sm:$0xff] }
  0x26   :  { %120 = vmatpush.msrb.mxu2 %v17_v4  ;;  %81 = vmatmul.f32.vlgmr.msra.gmra.mxu0 %v1119_v7  ;;  %v838_v46 = vld [vmem:[%s1584_s1 + $0x420] sm:$0xff]  ;;  %v852_v48 = vld [vmem:[%s1584_s1 + $0x490] sm:$0xff]  ;;  %v787_v52 = vld [vmem:[%s1584_s1 + $0x2a8] sm:$0xff] }
  0x27   :  { %242 = vmatpush.msra.mxu3 %v743_v3  ;;  %265 = vmatpush.msrb.mxu0 %v769_v6  ;;  %v786_v50 = vld [vmem:[%s1584_s1 + $0x2a0] sm:$0xff]  ;;  %v836_v51 = vld [vmem:[%s1584_s1 + $0x410] sm:$0xff]  ;;  %v851_v53 = vld [vmem:[%s1584_s1 + $0x488] sm:$0xff] }
  0x28   :  { %121 = vmatmul.f32.vlgmr.msrb.gmra.mxu2 %v1119_v7  ;;  %203 = vmatpush.msra.mxu1 %v740_v11  ;;  %v784_v54 = vld [vmem:[%s1584_s1 + $0x290] sm:$0xff]  ;;  %v834_v55 = vld [vmem:[%s1584_s1 + $0x400] sm:$0xff]  ;;  %v785_v56 = vld [vmem:[%s1584_s1 + $0x298] sm:$0xff] }
  0x29   :  { %243 = vmatpush.msra.mxu3 %v741_v8  ;;  %317 = vmatpush.msra.mxu2 %v808_v9  ;;  %v849_v57 = vld [vmem:[%s1584_s1 + $0x478] sm:$0xff]  ;;  %v782_v58 = vld [vmem:[%s1584_s1 + $0x280] sm:$0xff]  ;;  %v832_v59 = vld [vmem:[%s1584_s1 + $0x3f0] sm:$0xff] }
  0x2a   :  { %357 = vmatpush.msra.mxu0 %v809_v10  ;;  %204 = vmatpush.msra.mxu1 %v738_v16  ;;  %v783_v60 = vld [vmem:[%s1584_s1 + $0x288] sm:$0xff]  ;;  %v780_v62 = vld [vmem:[%s1584_s1 + $0x270] sm:$0xff]  ;;  %v830_v63 = vld [vmem:[%s1584_s1 + $0x3e0] sm:$0xff] }
  0x2b   :  { %244 = vmatpush.msra.mxu3 %v739_v12  ;;  %318 = vmatpush.msra.mxu2 %v806_v13  ;;  %v847_v61 = vld [vmem:[%s1584_s1 + $0x468] sm:$0xff]  ;;  %v781_v0 = vld [vmem:[%s1584_s1 + $0x278] sm:$0xff]  ;;  %v778_v2 = vld [vmem:[%s1584_s1 + $0x260] sm:$0xff] }
  0x2c   :  { %358 = vmatpush.msra.mxu0 %v807_v14  ;;  %205 = vmatpush.msra.mxu1 %v736_v20  ;;  %v845_v1 = vld [vmem:[%s1584_s1 + $0x458] sm:$0xff]  ;;  %v828_v3 = vld [vmem:[%s1584_s1 + $0x3d0] sm:$0xff]  ;;  %v779_v4 = vld [vmem:[%s1584_s1 + $0x268] sm:$0xff] }
  0x2d   :  { %245 = vmatpush.msra.mxu3 %v737_v17  ;;  %319 = vmatpush.msra.mxu2 %v804_v18  ;;  %v843_v5 = vld [vmem:[%s1584_s1 + $0x448] sm:$0xff]  ;;  %v814_v6 = vld [vmem:[%s1584_s1 + $0x380] sm:$0x7]  ;;  %v841_v9 = vld [vmem:[%s1584_s1 + $0x438] sm:$0xff] }
  0x2e   :  { %359 = vmatpush.msra.mxu0 %v805_v19  ;;  %246 = vmatmul.f32.vlgmr.msra.gmra.mxu3 %v1119_v7  ;;  %v826_v8 = vld [vmem:[%s1584_s1 + $0x3c0] sm:$0xff]  ;;  %v812_v10 = vld [vmem:[%s1584_s1 + $0x370] sm:$0xff]  ;;  %v839_v12 = vld [vmem:[%s1584_s1 + $0x428] sm:$0xff] }
  0x2f   :  { %206 = vmatmul.f32.vlgmr.msra.gmra.mxu1 %v1119_v7  ;;  %320 = vmatpush.msra.mxu2 %v802_v21  ;;  %v824_v11 = vld [vmem:[%s1584_s1 + $0x3b0] sm:$0xff]  ;;  %v822_v13 = vld [vmem:[%s1584_s1 + $0x3a0] sm:$0xff]  ;;  %v837_v16 = vld [vmem:[%s1584_s1 + $0x418] sm:$0xff] }
  0x30   :  { %360 = vmatpush.msra.mxu0 %v803_v22  ;;  %442 = vmatpush.msrb.mxu3 %v850_v23  ;;  %v810_v14 = vld [vmem:[%s1584_s1 + $0x360] sm:$0xff]  ;;  %v857_v17 = vld [vmem:[%s1584_s1 + $0x4b8] sm:$0x7]  ;;  %v820_v18 = vld [vmem:[%s1584_s1 + $0x390] sm:$0xff] }
  0x31   :  { %321 = vmatpush.msra.mxu2 %v800_v24  ;;  %777 = vmatmul.msk.f32.vlgmr.msrb.gmra.mxu0 %vm54_vm1, %v941_v15  ;;  %v835_v19 = vld [vmem:[%s1584_s1 + $0x408] sm:$0xff]  ;;  %v833_v21 = vld [vmem:[%s1584_s1 + $0x3f8] sm:$0xff] }
  0x32   :  { %361 = vmatpush.msra.mxu0 %v801_v25  ;;  %443 = vmatpush.msrb.mxu3 %v848_v26  ;;  %v855_v20 = vld [vmem:[%s1584_s1 + $0x4a8] sm:$0xff]  ;;  %v853_v22 = vld [vmem:[%s1584_s1 + $0x498] sm:$0xff] }
  0x33   :  { %322 = vmatpush.msra.mxu2 %v798_v27  ;;  %818 = vmatpush.msk.msrb.mxu1 %vm58_vm0, %v815_v28  ;;  %v831_v23 = vld [vmem:[%s1584_s1 + $0x3e8] sm:$0xff]  ;;  %v829_v24 = vld [vmem:[%s1584_s1 + $0x3d8] sm:$0xff] }
  0x34   :  { %362 = vmatpush.msra.mxu0 %v799_v29  ;;  %444 = vmatpush.msrb.mxu3 %v846_v30  ;;  %v827_v25 = vld [vmem:[%s1584_s1 + $0x3c8] sm:$0xff]  ;;  %v825_v26 = vld [vmem:[%s1584_s1 + $0x3b8] sm:$0xff]  ;;  %v552_v29 = vld [vmem:[%s1586_s2 + $0x1e0] sm:$0xff] }
  0x35   :  { %323 = vmatpush.msra.mxu2 %v796_v31  ;;  %391 = vmatpush.msrb.mxu1 %v813_v32  ;;  %v823_v27 = vld [vmem:[%s1584_s1 + $0x3a8] sm:$0xff]  ;;  %v821_v28 = vld [vmem:[%s1584_s1 + $0x398] sm:$0xff]  ;;  %v550_v30 = vld [vmem:[%s1586_s2 + $0x1a0] sm:$0xff] }
  0x36   :  { %363 = vmatpush.msra.mxu0 %v797_v33  ;;  %445 = vmatpush.msrb.mxu3 %v844_v34  ;;  %v549_v31 = vld [vmem:[%s1586_s2 + $0x180] sm:$0xff] }
  0x37   :  { %324 = vmatpush.msra.mxu2 %v794_v35  ;;  %392 = vmatpush.msrb.mxu1 %v811_v36  ;;  %v547_v32 = vld [vmem:[%s1586_s2 + $0x140] sm:$0xff] }
  0x38   :  { %364 = vmatpush.msra.mxu0 %v795_v37  ;;  %446 = vmatpush.msrb.mxu3 %v842_v38  ;;  %v546_v33 = vld [vmem:[%s1586_s2 + $0x120] sm:$0xff] }
  0x39   :  { %325 = vmatpush.msra.mxu2 %v792_v39  ;;  %858 = vmatpush.msk.msra.mxu1 %vm58_vm0, %v856_v40  ;;  %v545_v34 = vld [vmem:[%s1586_s2 + $0x100] sm:$0xff] }
  0x3a   :  { %365 = vmatpush.msra.mxu0 %v793_v41  ;;  %447 = vmatpush.msrb.mxu3 %v840_v42  ;;  %v544_v35 = vld [vmem:[%s1586_s2 + $0xe0] sm:$0xff] }
  0x3b   :  { %326 = vmatpush.msra.mxu2 %v790_v43  ;;  %476 = vmatpush.msra.mxu1 %v854_v44  ;;  %v543_v36 = vld [vmem:[%s1586_s2 + $0xc0] sm:$0xff] }
  0x3c   :  { %366 = vmatpush.msra.mxu0 %v791_v45  ;;  %448 = vmatpush.msrb.mxu3 %v838_v46  ;;  %v542_v37 = vld [vmem:[%s1586_s2 + $0xa0] sm:$0xff] }
  0x3d   :  { %327 = vmatpush.msra.mxu2 %v788_v47  ;;  %477 = vmatpush.msra.mxu1 %v852_v48  ;;  %v541_v38 = vld [vmem:[%s1586_s2 + $0x80] sm:$0xff] }
  0x3e   :  { %367 = vmatpush.msra.mxu0 %v789_v49  ;;  %819 = vmatmul.msk.f32.vlgmr.msrb.gmra.mxu1 %vm54_vm1, %v941_v15  ;;  %v540_v39 = vld [vmem:[%s1586_s2 + $0x60] sm:$0xff] }
  0x3f   :  { %328 = vmatpush.msra.mxu2 %v786_v50  ;;  %449 = vmatpush.msrb.mxu3 %v836_v51  ;;  %v539_v42 = vld [vmem:[%s1586_s2 + $0x40] sm:$0xff]  ;;  %v616_v50 = vld [vmem:[%s1586_s2 + $0x1e8] sm:$0xff] }
  0x40   :  { %368 = vmatpush.msra.mxu0 %v787_v52  ;;  %482 = vmatpush.msrb.mxu1 %v851_v53  ;;  %v538_v43 = vld [vmem:[%s1586_s2 + $0x20] sm:$0xff]  ;;  %v615_v51 = vld [vmem:[%s1586_s2 + $0x1c8] sm:$0xff] }
  0x41   :  { %329 = vmatpush.msra.mxu2 %v784_v54  ;;  %450 = vmatpush.msrb.mxu3 %v834_v55  ;;  %v537_v44 = vld [vmem:[%s1586_s2] sm:$0xff]  ;;  %v614_v53 = vld [vmem:[%s1586_s2 + $0x1a8] sm:$0xff] }
  0x42   :  { %369 = vmatpush.msra.mxu0 %v785_v56  ;;  %483 = vmatpush.msrb.mxu1 %v849_v57  ;;  %v554_v48 = vld [vmem:[%s1586_s2 + $0x220] sm:$0xff]  ;;  %v613_v56 = vld [vmem:[%s1586_s2 + $0x188] sm:$0xff] }
  0x43   :  { %330 = vmatpush.msra.mxu2 %v782_v58  ;;  %451 = vmatpush.msrb.mxu3 %v832_v59  ;;  %v553_v49 = vld [vmem:[%s1586_s2 + $0x200] sm:$0xff]  ;;  %v612_v58 = vld [vmem:[%s1586_s2 + $0x168] sm:$0xff] }
  0x44   :  { %370 = vmatpush.msra.mxu0 %v783_v60  ;;  %484 = vmatpush.msrb.mxu1 %v847_v61  ;;  %v611_v59 = vld [vmem:[%s1586_s2 + $0x148] sm:$0xff] }
  0x45   :  { %331 = vmatpush.msra.mxu2 %v780_v62  ;;  %452 = vmatpush.msrb.mxu3 %v830_v63 }
  0x46   :  { %371 = vmatpush.msra.mxu0 %v781_v0  ;;  %485 = vmatpush.msrb.mxu1 %v845_v1 }
  0x47   :  { %332 = vmatpush.msra.mxu2 %v778_v2  ;;  %453 = vmatpush.msrb.mxu3 %v828_v3  ;;  %v862_v3 = vld [vmem:[%s1586_s2 + $0x240] ss:$8 sm:$0x3] }
  0x48   :  { %372 = vmatpush.msra.mxu0 %v779_v4  ;;  %486 = vmatpush.msrb.mxu1 %v843_v5 }
  0x49   :  { %333 = vmatmul.f32.vlgmr.msra.gmra.mxu2 %v1119_v7  ;;  %373 = vmatmul.f32.vlgmr.msra.gmra.mxu0 %v1119_v7 }
  0x4a   :  { %816 = vmatpush.msk.msrb.mxu2 %vm58_vm0, %v814_v6  ;;  %454 = vmatpush.msrb.mxu3 %v826_v8  ;;  %v529_v8 = vperm.slane %v862_v3, 0 }
  0x4b   :  { %487 = vmatpush.msrb.mxu1 %v841_v9  ;;  %560 = vmatpush.msrb.mxu0 %v552_v29  ;;  %v607_v29 = vld [vmem:[%s1586_s2 + $0xc8] sm:$0xff] }
  0x4c   :  { %351 = vmatpush.msrb.mxu2 %v812_v10  ;;  %455 = vmatpush.msrb.mxu3 %v824_v11 }
  0x4d   :  { %488 = vmatpush.msrb.mxu1 %v839_v12 }
  0x4e   :  { %456 = vmatpush.msrb.mxu3 %v822_v13  ;;  %352 = vmatpush.msrb.mxu2 %v810_v14 }
  0x4f   :  { %489 = vmatpush.msrb.mxu1 %v837_v16 }
  0x50   :  { %860 = vmatpush.msk.msra.mxu2 %vm58_vm0, %v857_v17  ;;  %457 = vmatpush.msrb.mxu3 %v820_v18 }
  0x51   :  { %859 = vmatmul.msk.f32.vlgmr.msra.gmra.mxu1 %vm54_vm1, %v941_v15  ;;  %817 = vmatmul.msk.f32.vlgmr.msrb.gmra.mxu2 %vm54_vm1, %v941_v15 }
  0x52   :  { %490 = vmatpush.msrb.mxu1 %v835_v19  ;;  %458 = vmatmul.f32.vlgmr.msrb.gmra.mxu3 %v1119_v7 }
  0x53   :  { %516 = vmatpush.msra.mxu2 %v855_v20  ;;  %618 = vmatpush.msra.mxu3 %v616_v50  ;;  %v686_v50 = vld [vmem:[%s1586_s2 + $0x1b8] sm:$0xff] }
  0x54   :  { %491 = vmatpush.msrb.mxu1 %v833_v21 }
  0x55   :  { %517 = vmatpush.msra.mxu2 %v853_v22  ;;  %619 = vmatpush.msra.mxu3 %v615_v51  ;;  %v530_v22 = vperm.slane %v862_v3, 1  ;;  %v685_v51 = vld [vmem:[%s1586_s2 + $0x198] sm:$0xff] }
  0x56   :  { %492 = vmatpush.msrb.mxu1 %v831_v23  ;;  %v673_v3 = vld [vmem:[%s1586_s2 + $0x18] sm:$0xff] }
  0x57   :  { %594 = vmatpush.msrb.mxu2 %v554_v48  ;;  %620 = vmatpush.msra.mxu3 %v614_v53  ;;  %v688_v48 = vld [vmem:[%s1586_s2 + $0x1f8] sm:$0xff] }
  0x58   :  { %493 = vmatpush.msrb.mxu1 %v829_v24  ;;  %v683_v53 = vld [vmem:[%s1586_s2 + $0x158] sm:$0xff] }
  0x59   :  { %861 = vmatmul.msk.f32.vlgmr.msra.gmra.mxu2 %vm54_vm1, %v941_v15  ;;  %v551_v15 = vld [vmem:[%s1586_s2 + $0x1c0] sm:$0xff]  ;;  %621 = vmatpush.msra.mxu3 %v613_v56  ;;  %v680_v56 = vld [vmem:[%s1586_s2 + $0xf8] sm:$0xff] }
  0x5a   :  { %494 = vmatpush.msrb.mxu1 %v827_v25  ;;  %561 = vmatpush.msrb.mxu0 %v551_v15  ;;  %v606_v15 = vld [vmem:[%s1586_s2 + $0xa8] sm:$0xff] }
  0x5b   :  { %595 = vmatpush.msrb.mxu2 %v553_v49  ;;  %622 = vmatpush.msra.mxu3 %v612_v58  ;;  %v687_v49 = vld [vmem:[%s1586_s2 + $0x1d8] sm:$0xff] }
  0x5c   :  { %495 = vmatpush.msrb.mxu1 %v825_v26  ;;  %562 = vmatpush.msrb.mxu0 %v550_v30  ;;  %v610_v26 = vld [vmem:[%s1586_s2 + $0x128] sm:$0xff]  ;;  %v678_v58 = vld [vmem:[%s1586_s2 + $0xb8] sm:$0xff] }
  0x5d   :  { %623 = vmatpush.msra.mxu3 %v611_v59  ;;  %v605_v30 = vld [vmem:[%s1586_s2 + $0x88] sm:$0xff] }
  0x5e   :  { %496 = vmatpush.msrb.mxu1 %v823_v27  ;;  %563 = vmatpush.msrb.mxu0 %v549_v31  ;;  %v609_v27 = vld [vmem:[%s1586_s2 + $0x108] sm:$0xff] }
  0x5f   :  { %624 = vmatpush.msra.mxu3 %v610_v26  ;;  %v604_v31 = vld [vmem:[%s1586_s2 + $0x68] sm:$0xff] }
  0x60   :  { %497 = vmatpush.msrb.mxu1 %v821_v28  ;;  %v608_v28 = vld [vmem:[%s1586_s2 + $0xe8] sm:$0xff] }
  0x61   :  { %498 = vmatmul.f32.vlgmr.msrb.gmra.mxu1 %v1119_v7  ;;  %v548_v7 = vld [vmem:[%s1586_s2 + $0x160] sm:$0xff]  ;;  %625 = vmatpush.msra.mxu3 %v609_v27  ;;  %v617_v59 = vld [vmem:[%s1586_s2 + $0x268] ss:$0 sm:$0xff] }
  0x62   :  { %564 = vmatpush.msrb.mxu0 %v548_v7  ;;  %v603_v7 = vld [vmem:[%s1586_s2 + $0x48] sm:$0xff]  ;;  %690 = vmatpush.msra.mxu1 %v688_v48 }
  0x63   :  { %626 = vmatpush.msra.mxu3 %v608_v28 }
  0x64   :  { %565 = vmatpush.msrb.mxu0 %v547_v32  ;;  %v602_v32 = vld [vmem:[%s1586_s2 + $0x28] sm:$0xff]  ;;  %691 = vmatpush.msra.mxu1 %v687_v49 }
  0x65   :  { %627 = vmatpush.msra.mxu3 %v607_v29 }
  0x66   :  { %566 = vmatpush.msrb.mxu0 %v546_v33  ;;  %v601_v33 = vld [vmem:[%s1586_s2 + $0x8] sm:$0xff]  ;;  %692 = vmatpush.msra.mxu1 %v686_v50 }
  0x67   :  { %628 = vmatpush.msra.mxu3 %v606_v15 }
  0x68   :  { %567 = vmatpush.msrb.mxu0 %v545_v34  ;;  %v646_v34 = vld [vmem:[%s1586_s2 + $0xf0] sm:$0xff]  ;;  %693 = vmatpush.msra.mxu1 %v685_v51 }
  0x69   :  { %629 = vmatpush.msra.mxu3 %v605_v30  ;;  %660 = vmatpush.msra.mxu2 %v646_v34 }
  0x6a   :  { %568 = vmatpush.msrb.mxu0 %v544_v35  ;;  %v645_v35 = vld [vmem:[%s1586_s2 + $0xd0] sm:$0xff] }
  0x6b   :  { %630 = vmatpush.msra.mxu3 %v604_v31  ;;  %661 = vmatpush.msra.mxu2 %v645_v35 }
  0x6c   :  { %569 = vmatpush.msrb.mxu0 %v543_v36  ;;  %v644_v36 = vld [vmem:[%s1586_s2 + $0xb0] sm:$0xff] }
  0x6d   :  { %631 = vmatpush.msra.mxu3 %v603_v7  ;;  %662 = vmatpush.msra.mxu2 %v644_v36 }
  0x6e   :  { %570 = vmatpush.msrb.mxu0 %v542_v37  ;;  %v643_v37 = vld [vmem:[%s1586_s2 + $0x90] sm:$0xff] }
  0x6f   :  { %632 = vmatpush.msra.mxu3 %v602_v32  ;;  %663 = vmatpush.msra.mxu2 %v643_v37 }
  0x70   :  { %571 = vmatpush.msrb.mxu0 %v541_v38  ;;  %v642_v38 = vld [vmem:[%s1586_s2 + $0x70] sm:$0xff] }
  0x71   :  { %633 = vmatpush.msra.mxu3 %v601_v33  ;;  %664 = vmatpush.msra.mxu2 %v642_v38 }
  0x72   :  { %572 = vmatpush.msrb.mxu0 %v540_v39  ;;  %v555_v39 = vld [vmem:[%s1586_s2 + $0x260] ss:$0 sm:$0xff] }
  0x74   :  { %573 = vmatpush.msrb.mxu0 %v539_v42 }
  0x76   :  { %574 = vmatpush.msrb.mxu0 %v538_v43 }
  0x78   :  { %575 = vmatpush.msrb.mxu0 %v537_v44 }
  0x8c   :  { %v102_v41 = vpop.f32.mrf.mxu2 }
  0x8d   :  { %v142_v40 = vpop.f32.mrf.mxu3 }
  0xa3   :  { %v82_v52 = vpop.f32.mrf.mxu0 }
  0xa4   :  { %v103_v62 = vadd.f32 %v102_v41, %v82_v52  ;;  %v684_v52 = vld [vmem:[%s1586_s2 + $0x178] sm:$0xff] }
  0xa5   :  { %v227_v45 = vpop.f32.mrf.mxu3  ;;  %694 = vmatpush.msra.mxu1 %v684_v52 }
  0xa7   :  { %695 = vmatpush.msra.mxu1 %v683_v53 }
  0xab   :  { %v122_v47 = vpop.f32.mrf.mxu2 }
  0xac   :  { %v207_v46 = vpop.f32.mrf.mxu1  ;;  %v143_v16 = vadd.f32 %v142_v40, %v122_v47  ;;  %v639_v47 = vld [vmem:[%s1586_s2 + $0x10] sm:$0xff] }
  0xad   :  { %v228_v63 = vadd.f32 %v227_v45, %v207_v46  ;;  %v641_v45 = vld [vmem:[%s1586_s2 + $0x50] sm:$0xff] }
  0xae   :  { %v267_v60 = vpop.f32.mrf.mxu0  ;;  %665 = vmatpush.msra.mxu2 %v641_v45  ;;  %v640_v46 = vld [vmem:[%s1586_s2 + $0x30] sm:$0xff] }
  0xaf   :  { %v270_v5 = vmax.f32 %v103_v62, %v228_v63  ;;  %v677_v63 = vld [vmem:[%s1586_s2 + $0x98] sm:$0xff] }
  0xb0   :  { %666 = vmatpush.msra.mxu2 %v640_v46 }
  0xb1   :  { %v247_v57 = vpop.f32.mrf.mxu3 }
  0xb2   :  { %v268_v11 = vadd.f32 %v267_v60, %v247_v57  ;;  %667 = vmatpush.msra.mxu2 %v639_v47  ;;  %v679_v57 = vld [vmem:[%s1586_s2 + $0xd8] sm:$0xff] }
  0xb4   :  { %v271_v20 = vmax.f32 %v143_v16, %v268_v11  ;;  %v689_v11 = vld [vmem:[%s1586_s2 + $0x258] ss:$0 sm:$0xff] }
  0xbb   :  { %v394_v54 = vpop.f32.mrf.mxu1 }
  0xc6   :  { %v374_v10 = vpop.f32.mrf.mxu0 }
  0xc7   :  { %v395_v17 = vadd.f32 %v394_v54, %v374_v10  ;;  %v682_v54 = vld [vmem:[%s1586_s2 + $0x138] sm:$0xff] }
  0xc8   :  { %696 = vmatpush.msra.mxu1 %v682_v54 }
  0xcc   :  { %v334_v55 = vpop.f32.mrf.mxu2 }
  0xce   :  { %v479_v61 = vpop.f32.mrf.mxu1 }
  0xd4   :  { %v354_v0 = vpop.f32.mrf.mxu2 }
  0xd5   :  { %v355_v1 = vadd.f32 %v354_v0, %v334_v55  ;;  %v459_v2 = vpop.f32.mrf.mxu3  ;;  %v681_v55 = vld [vmem:[%s1586_s2 + $0x118] sm:$0xff] }
  0xd6   :  { %v480_v4 = vadd.f32 %v479_v61, %v459_v2  ;;  %697 = vmatpush.msra.mxu1 %v681_v55  ;;  %v676_v0 = vld [vmem:[%s1586_s2 + $0x78] sm:$0xff] }
  0xd7   :  { %v674_v2 = vld [vmem:[%s1586_s2 + $0x38] sm:$0xff] }
  0xd8   :  { %v522_v6 = vmax.f32 %v355_v1, %v480_v4  ;;  %698 = vmatpush.msra.mxu1 %v680_v56  ;;  %v675_v1 = vld [vmem:[%s1586_s2 + $0x58] sm:$0xff]  ;;  %v647_v4 = vld [vmem:[%s1586_s2 + $0x250] ss:$0 sm:$0xff] }
  0xda   :  { %v524_v9 = vmax.f32 %v270_v5, %v522_v6  ;;  %699 = vmatpush.msra.mxu1 %v679_v57 }
  0xdc   :  { %v533_v12 = vadd.f32 %v529_v8, %v524_v9  ;;  %v519_v13 = vpop.f32.mrf.mxu2  ;;  %700 = vmatpush.msra.mxu1 %v678_v58  ;;  %v710_v9 = vlaneseq }
  0xde   :  { %v499_v14 = vpop.f32.mrf.mxu1  ;;  %v535_v18 = vmax.f32 %v533_v12, 0.0  ;;  %701 = vmatpush.msra.mxu1 %v677_v63  ;;  %v711_v10 = vand.u32 127, %v710_v9 }
  0xdf   :  { %v520_v19 = vadd.f32 %v519_v13, %v499_v14 }
  0xe0   :  { %576 = vmatmul.f32.vlgmr.msrb.gmra.mxu0 %v535_v18  ;;  %702 = vmatpush.msra.mxu1 %v676_v0  ;;  %vm712_vm4 = vcmp.lt.s32.totalorder %v711_v10, 7 }
  0xe1   :  { %v523_v21 = vmax.f32 %v395_v17, %v520_v19 }
  0xe2   :  { %703 = vmatpush.msra.mxu1 %v675_v1 }
  0xe3   :  { %v525_v23 = vmax.f32 %v271_v20, %v523_v21 }
  0xe4   :  { %704 = vmatpush.msra.mxu1 %v674_v2 }
  0xe5   :  { %v534_v24 = vadd.f32 %v530_v22, %v525_v23 }
  0xe6   :  { %705 = vmatpush.msra.mxu1 %v673_v3 }
  0xe7   :  { %v536_v25 = vmax.f32 %v534_v24, 0.0 }
  0xe9   :  { %863 = vmatmul.msk.f32.vlgmr.msrb.gmra.mxu2 %vm556_vm2, %v536_v25 }
 0x15d   :  { %v577_v40 = vpop.f32.mrf.mxu0 }
 0x15e   :  { %v578_v41 = vadd.f32 %v577_v40, %v555_v39 }
 0x16c   :  { %v597_v42 = vpop.f32.mrf.mxu2 }
 0x16d   :  { %v598_v43 = vadd.f32 %v597_v42, %v578_v41 }
 0x16f   :  { %v600_v44 = vmax.f32 %v598_v43, 0.0 }
 0x171   :  { %634 = vmatmul.f32.vlgmr.msra.gmra.mxu3 %v600_v44 }
 0x1f4   :  { %v635_v60 = vpop.f32.mrf.mxu3 }
 0x1f5   :  { %v636_v61 = vadd.f32 %v635_v60, %v617_v59 }
 0x1f7   :  { %v638_v62 = vmax.f32 %v636_v61, 0.0 }
 0x1f9   :  { %864 = vmatmul.msk.f32.vlgmr.msra.gmra.mxu2 %vm648_vm3, %v638_v62 }
 0x27c   :  { %v669_v5 = vpop.f32.mrf.mxu2 }
 0x27d   :  { %v670_v6 = vadd.f32 %v669_v5, %v647_v4 }
 0x27f   :  { %865 = vtanh.f32 %v670_v6 }
 0x285   :  { %v866_v8 = vpop.eup %865 }
 0x286   :  { %706 = vmatmul.f32.vlgmr.msra.gmra.mxu1 %v866_v8 }
 0x303   :  { %v707_v12 = vpop.f32.mrf.mxu1 }
 0x304   :  { %v708_v13 = vadd.f32 %v707_v12, %v689_v11 }
 0x306   :  { %v713_v14 = vsel %vm712_vm4, %v708_v13, -1e+30 }
 0x307   :  { %714 = vmax.xlane.f32.xlu0 %v713_v14 }
 0x37a   :  { %v715_v16 = vpop.xlane.xlu0 %714 }
 0x37b   :  { %v716_v17 = vsub.f32 %v708_v13, %v715_v16 }
 0x37d   :  { %v717_v18 = vmul.f32 1.442695, %v716_v17 }
 0x37f   :  { %867 = vpow2.f32 %v717_v18 }
 0x385   :  { %v868_v19 = vpop.eup %867 }
 0x386   :  { %v719_v20 = vsel %vm712_vm4, %v868_v19, 0.0 }
 0x387   :  { %720 = vadd.xlane.f32.xlu0 %v719_v20 }
 0x3fa   :  { %v721_v21 = vpop.xlane.xlu0 %720 }
 0x3fb   :  { %869 = vlog2.f32 %v721_v21 }
 0x401   :  { %v870_v22 = vpop.eup %869 }
 0x402   :  { %v723_v23 = vmul.f32 0.6931472, %v870_v22 }
 0x404   :  { %v724_v24 = vadd.f32 %v723_v23, %v715_v16 }
 0x406   :  { %v725_v25 = vsub.f32 %v708_v13, %v724_v24 }
 0x408   :  { %v726_v26 = vsel %vm712_vm4, %v725_v25, %v708_v13 }
 0x409   :  { %727 = vst [vmem:[%s1587_s3] sm:$0xff] %v726_v26 }

</bundles_post_ra>
